<compile_context>
chip_gen: v6e
topology: v6e:2x2x1
jax: 0.10.0
libtpu: 0.0.40
codegen_flags: <defaults>
</compile_context>

<pallas_src>
import jax
import jax.numpy as jnp
from jax.experimental import pallas as pl
from jax.experimental.pallas import tpu as pltpu

BIAS = 0.0001          # `bias` constant from the PyTorch file
TEMPERATURE = 1.0      # `temperature` constant
BN_EPS = 1e-5          # torch.nn.BatchNorm1d default eps
LANE = 128


def _round_up(x, m):
    return ((x + m - 1) // m) * m


def _pick_vmem_limit(frac=0.75, fallback=64 * 1024 * 1024):
    # ~96 MiB on v5e/v6e (128 MiB physical), ~48 MiB on v7x (64 MiB physical).
    try:
        cap = getattr(pltpu.get_tpu_info(), "vmem_capacity_bytes", None)
    except Exception:
        cap = None
    if not cap:
        return fallback
    return int(cap * frac)


VMEM_LIMIT = _pick_vmem_limit()


# ----------------- kernel 1: BatchNorm1d + ReLU (per node type) -------------
def bn_relu_kernel(cnt_ref, x_ref, gamma_ref, beta_ref, o_ref):
    t = pl.program_id(0)
    n = cnt_ref[t]                                        # valid rows (SMEM scalar)
    x = x_ref[0]                                          # [Nmax, CPAD]
    row = jax.lax.broadcasted_iota(jnp.int32, x.shape, 0)
    mask = (row < n).astype(jnp.float32)
    cnt = n.astype(jnp.float32)
    mean = jnp.sum(x * mask, axis=0, keepdims=True) / cnt
    d = (x - mean) * mask
    var = jnp.sum(d * d, axis=0, keepdims=True) / cnt     # biased var (torch BN batch stats)
    xn = (x - mean) * jax.lax.rsqrt(var + BN_EPS)
    y = jnp.maximum(xn * gamma_ref[0] + beta_ref[0], 0.0)
    o_ref[0] = y * mask


def bn_relu_batched(x, gamma, beta, counts):
    t, nmax, c = x.shape          # c is lane-padded (multiple of 128) by caller
    return pl.pallas_call(
        bn_relu_kernel,
        out_shape=jax.ShapeDtypeStruct((t, nmax, c), jnp.float32),
        grid_spec=pltpu.PrefetchScalarGridSpec(
            num_scalar_prefetch=1,
            grid=(t,),
            in_specs=[pl.BlockSpec((1, nmax, c), lambda i, cnt: (i, 0, 0)),
                      pl.BlockSpec((1, 1, c), lambda i, cnt: (i, 0, 0)),
                      pl.BlockSpec((1, 1, c), lambda i, cnt: (i, 0, 0))],
            out_specs=pl.BlockSpec((1, nmax, c), lambda i, cnt: (i, 0, 0))),
        compiler_params=pltpu.CompilerParams(
            dimension_semantics=("parallel",),
            vmem_limit_bytes=VMEM_LIMIT),
    )(counts, x, gamma, beta)


# --- kernel 2: fused HypergraphConv + BN + ReLU + score conv + gumbel -------
def make_edge_pipeline_kernel(e, m, ehid_pad):
    def kernel(ea_ref, h_ref, aux_ref, w1_ref, p_ref, out_ref):
        ea = ea_ref[0]                                    # [E, FIN_PAD] bf16
        H = h_ref[0]                                      # [E, M]       bf16 (only copy)
        aux = aux_ref[0]                                  # [RMAX, 8]    f32
        p = p_ref[0]                                      # [8, EHID_PAD] f32

        # exact wrapper-precomputed inverses / gumbel gate (static slices)
        dinv = aux[0:e, 0:1]                              # D^-1 (node degrees)
        gate = aux[0:e, 1:2]                              # log(eps) - log(1-eps)
        binv = aux[0:m, 2:3]                              # B^-1 (hyperedge degrees)
        b1, gamma, beta = p[0:1, :], p[1:2, :], p[2:3, :]
        ws, bs = p[3:4, :], p[4:5, 0:1]

        # HypergraphConv(Fin -> ehid):  D^-1 H B^-1 H^T (X @ W) + b
        # bf16 operands on the MXU, f32 accumulation.  H^T contraction done by
        # contracting over H's row axis (no transposed copy, no XLU transpose).
        xt = jnp.dot(ea, w1_ref[0], preferred_element_type=jnp.float32)        # [E, ehid]
        e_feat = jax.lax.dot_general(
            H, xt.astype(jnp.bfloat16),
            dimension_numbers=(((0,), (0,)), ((), ())),
            preferred_element_type=jnp.float32) * binv                         # [M, ehid]
        y = jnp.dot(H, e_feat.astype(jnp.bfloat16),
                    preferred_element_type=jnp.float32) * dinv + b1            # [E, ehid]

        # rel_bn (batch statistics) + rel_act (ReLU) in f32
        mean = jnp.mean(y, axis=0, keepdims=True)
        var = jnp.mean((y - mean) ** 2, axis=0, keepdims=True)
        yh = jnp.maximum((y - mean) * jax.lax.rsqrt(var + BN_EPS) * gamma + beta, 0.0)
        out_ref[0, :, 0:ehid_pad] = yh
        # F.dropout(training=False) is identity -> omitted.

        # score conv reassociated: t = yh @ ws^T first, then the incidence
        # propagation at width 1 (exact; avoids a second [E,ehid]-wide pass).
        t_col = jnp.sum(yh * ws, axis=1, keepdims=True)                        # [E, 1]
        e_s = jax.lax.dot_general(
            H, t_col.astype(jnp.bfloat16),
            dimension_numbers=(((0,), (0,)), ((), ())),
            preferred_element_type=jnp.float32) * binv                         # [M, 1]
        s = jnp.dot(H, e_s.astype(jnp.bfloat16),
                    preferred_element_type=jnp.float32) * dinv + bs            # [E, 1]

        # gumbel_sampling with precomputed gate; score packed lane-dense into
        # the output slab (unmasked 128-wide store).
        score = jax.nn.sigmoid((gate + s) / TEMPERATURE)
        out_ref[0, :, ehid_pad:ehid_pad + LANE] = jnp.broadcast_to(score, (e, LANE))
    return kernel


def edge_pipeline_batched(edge_attr_p, H, aux, w1_p, pslab):
    r, e, fin_p = edge_attr_p.shape
    m = H.shape[2]
    rmax = aux.shape[1]
    ehid_p = w1_p.shape[2]
    kernel = make_edge_pipeline_kernel(e, m, ehid_p)
    return pl.pallas_call(
        kernel,
        out_shape=jax.ShapeDtypeStruct((r, e, ehid_p + LANE), jnp.float32),
        grid=(r,),
        in_specs=[pl.BlockSpec((1, e, fin_p), lambda i: (i, 0, 0)),
                  pl.BlockSpec((1, e, m), lambda i: (i, 0, 0)),
                  pl.BlockSpec((1, rmax, 8), lambda i: (i, 0, 0)),
                  pl.BlockSpec((1, fin_p, ehid_p), lambda i: (i, 0, 0)),
                  pl.BlockSpec((1, 8, ehid_p), lambda i: (i, 0, 0))],
        out_specs=pl.BlockSpec((1, e, ehid_p + LANE), lambda i: (i, 0, 0)),
        compiler_params=pltpu.CompilerParams(
            dimension_semantics=("parallel",),
            vmem_limit_bytes=VMEM_LIMIT),
    )(edge_attr_p.astype(jnp.bfloat16), H.astype(jnp.bfloat16), aux,
      w1_p.astype(jnp.bfloat16), pslab)


# ---------------- kernel 3: multi-g build (adj matmul + gcn_norm) -----------
def multig_kernel(a_ref, b_ref, o_ref):
    a = a_ref[0]                                          # [Ns, Nd] bf16
    b = b_ref[0]                                          # [Nd, Ns] bf16
    g = jnp.dot(a, b, preferred_element_type=jnp.float32)  # adj_sd @ adj_ds (f32)
    n = g.shape[0]
    r = jax.lax.broadcasted_iota(jnp.int32, (n, n), 0)
    c = jax.lax.broadcasted_iota(jnp.int32, (n, n), 1)
    on_diag = r == c
    # add_remaining_self_loops(fill_value=1): the (i,i) value IS the diagonal,
    # add 1 only where it is zero (no masked row-reduce needed).
    # TODO(synk): dense g==0 test vs. PyG's sparse structural check can differ
    # for structurally-present zero-valued self loops.
    g_sl = g + jnp.where(on_diag & (g == 0.0), 1.0, 0.0)
    # gcn_norm: deg = scatter-by-col; norm = d^-1/2[row] * w * d^-1/2[col]
    deg = jnp.sum(g_sl, axis=0, keepdims=True)            # [1, N] column sums
    dinv_c = jnp.where(deg > 0.0, jax.lax.rsqrt(deg), 0.0)
    o_ref[0] = dinv_c.T * g_sl * dinv_c


def normalized_multi_g_batched(a_stack, b_stack):
    k, ns, nd = a_stack.shape
    return pl.pallas_call(
        multig_kernel,
        out_shape=jax.ShapeDtypeStruct((k, ns, ns), jnp.float32),
        grid=(k,),
        in_specs=[pl.BlockSpec((1, ns, nd), lambda i: (i, 0, 0)),
                  pl.BlockSpec((1, nd, ns), lambda i: (i, 0, 0))],
        out_specs=pl.BlockSpec((1, ns, ns), lambda i: (i, 0, 0)),
        compiler_params=pltpu.CompilerParams(
            dimension_semantics=("parallel",),
            vmem_limit_bytes=VMEM_LIMIT),
    )(a_stack.astype(jnp.bfloat16), b_stack.astype(jnp.bfloat16))


# ------------------------------- glue ---------------------------------------
def toy_hetero_encoder(x_dict, edge_index_dict):
    # TODO(synk): `encoder` is an external GNN passed to forward(); stand-in
    # returns the raw features as the last-layer output z[-1].
    return [x_dict]


def build_incidence(edge_index, n_src, n_dst):
    # DHT-style incidence: each graph edge (hypergraph node) belongs to the
    # hyperedges of its two endpoints (dst hyperedges offset by n_src).
    # TODO(synk): the reference uses precomputed data.hyperedge_dict and the
    # degree-1/self-loop fix-up of DHT(add_loops=True) (data-dependent shapes).
    src = edge_index[0]
    dst = edge_index[1] + n_src
    m = n_src + n_dst
    return (jax.nn.one_hot(src, m, dtype=jnp.float32)
            + jax.nn.one_hot(dst, m, dtype=jnp.float32))


if __name__ == "__main__":
    key = jax.random.PRNGKey(0)
    ks = jax.random.split(key, 16)

    NA, NB = 8, 8            # nodes of type 'a' / 'b'
    EHID = 32                # self.ehid
    FIN = 2 * EHID           # num_edge_features = 2*ehid (concat of src/dst feats)
    E_AB, E_BA = 16, 16      # edges per relation
    target_type = "a"

    EHID_PAD = _round_up(EHID, LANE)   # lane-dense feature widths (zero padding is exact)
    FIN_PAD = _round_up(FIN, LANE)

    x_dict = {"a": jax.random.normal(ks[0], (NA, EHID), jnp.float32),
              "b": jax.random.normal(ks[1], (NB, EHID), jnp.float32)}
    edge_index_dict = {
        ("a", "to", "b"): jnp.stack([jax.random.randint(ks[2], (E_AB,), 0, NA),
                                     jax.random.randint(ks[3], (E_AB,), 0, NB)]),
        ("b", "to", "a"): jnp.stack([jax.random.randint(ks[4], (E_BA,), 0, NB),
                                     jax.random.randint(ks[5], (E_BA,), 0, NA)]),
    }
    n_nodes = {"a": NA, "b": NB}

    # z = encoder(x_dict, edge_index_dict); x_dict = z[-1]
    x_dict = dict(toy_hetero_encoder(x_dict, edge_index_dict)[-1])

    # ---- BatchNorm1d + ReLU for every node type in ONE gridded pallas_call ----
    types = list(x_dict.keys())
    sizes = {k: x_dict[k].shape[0] for k in types}
    nmax = _round_up(max(sizes.values()), 8)
    x_stack = jnp.stack([jnp.pad(x_dict[k],
                                 ((0, nmax - sizes[k]), (0, EHID_PAD - EHID)))
                         for k in types])                               # [T, Nmax, CPAD]
    counts = jnp.array([sizes[k] for k in types], jnp.int32)
    gamma_stack = jnp.ones((len(types), 1, EHID_PAD), jnp.float32)      # fresh BatchNorm1d init
    beta_stack = jnp.zeros((len(types), 1, EHID_PAD), jnp.float32)
    xbn = bn_relu_batched(x_stack, gamma_stack, beta_stack, counts)
    x_dict = {k: xbn[i, :sizes[k], :EHID] for i, k in enumerate(types)}

    # ---- per-relation edge features + incidence, stacked into one call -------
    rels = list(edge_index_dict.keys())
    assert len({edge_index_dict[et].shape[1] for et in rels}) == 1, \
        "demo stacks equally-sized relations"  # TODO(synk): pad ragged relations + row-mask rel_bn
    ea_list, h_list = [], []
    for et in rels:
        src, _, dst = et
        ei = edge_index_dict[et]
        # edge_attr = cat(x_src[ei0], x_dst[ei1]) -- gather/concat is glue
        ea = jnp.concatenate([x_dict[src][ei[0]], x_dict[dst][ei[1]]], axis=1)
        ea_list.append(jnp.pad(ea, ((0, 0), (0, FIN_PAD - FIN))))
        h_list.append(build_incidence(ei, n_nodes[src], n_nodes[dst]))
    ea_stack = jnp.stack(ea_list)                                       # [R, E, FIN_PAD]
    h_stack = jnp.stack(h_list)                                         # [R, E, M]
    R, E = ea_stack.shape[0], ea_stack.shape[1]
    M = h_stack.shape[2]
    RMAX = _round_up(max(E, M), 8)

    # exact integer degrees + exact f32 inverses in the wrapper (correctness)
    ddeg = jnp.sum(h_stack, axis=2)                                     # [R, E] node degrees D
    bdeg = jnp.sum(h_stack, axis=1)                                     # [R, M] hyperedge degrees B
    dinv = jnp.where(ddeg > 0, 1.0 / ddeg, 0.0)
    binv = jnp.where(bdeg > 0, 1.0 / bdeg, 0.0)

    # deterministic parameters (fused slab) + precomputed gumbel gate per relation
    w1_l, pslab_l, gate_l = [], [], []
    for i, et in enumerate(rels):
        kw = jax.random.split(ks[6 + i], 3)
        w1 = jax.random.normal(kw[0], (FIN, EHID), jnp.float32) / jnp.sqrt(FIN)
        w1_l.append(jnp.pad(w1, ((0, FIN_PAD - FIN), (0, EHID_PAD - EHID))))
        ws = jax.random.normal(kw[1], (EHID,), jnp.float32) / jnp.sqrt(EHID)
        p = jnp.zeros((8, EHID_PAD), jnp.float32)   # row0=b1, row1=gamma, row2=beta, row3=ws, row4[0]=bs
        p = p.at[1, :EHID].set(1.0)                 # rel_bn gamma
        p = p.at[3, :EHID].set(ws)                  # score conv weight
        pslab_l.append(p)
        u = jax.random.uniform(kw[2], (E,), jnp.float32)                # ~ torch.rand
        eps = (BIAS - (1.0 - BIAS)) * u + (1.0 - BIAS)
        gate_l.append(jnp.log(eps) - jnp.log(1.0 - eps))
    w1_stack = jnp.stack(w1_l)                                          # [R, FIN_PAD, EHID_PAD]
    pslab = jnp.stack(pslab_l)                                          # [R, 8, EHID_PAD]
    gate = jnp.stack(gate_l)                                            # [R, E]

    # single fused aux slab: col0 = D^-1 (E rows), col1 = gumbel gate (E rows),
    # col2 = B^-1 (M rows) -> one DMA per grid step instead of three.
    aux = jnp.zeros((R, RMAX, 8), jnp.float32)
    aux = aux.at[:, :E, 0].set(dinv)
    aux = aux.at[:, :E, 1].set(gate)
    aux = aux.at[:, :M, 2].set(binv)

    out = edge_pipeline_batched(ea_stack, h_stack, aux, w1_stack, pslab)
    edge_h = out[:, :, :EHID]                                           # [R, E, EHID]
    score = out[:, :, EHID_PAD]                                         # [R, E]
    edge_h_dict = {et: edge_h[i] for i, et in enumerate(rels)}
    init_w = {et: score[i] for i, et in enumerate(rels)}                # init_edge_weight_dict
    hetero_w = {et: 1.0 - score[i] for i, et in enumerate(rels)}        # hetero_edge_weight_dict

    # ---- edge_dict_to_multi_g: scatter weights to dense adjacency (glue), ----
    # ---- then A_sd @ A_ds + gcn_norm for init & hetero in ONE gridded call ---
    def dense_adj(weight_dict):
        adj = {}
        for et, ei in edge_index_dict.items():
            src, _, dst = et
            a = jnp.zeros((n_nodes[src], n_nodes[dst]), jnp.float32)
            adj[(src, dst)] = a.at[ei[0], ei[1]].add(weight_dict[et])
        return adj

    adj_init = dense_adj(init_w)
    adj_het = dense_adj(hetero_w)

    multi_g, hetero_multi_g = {}, {}
    for (src, dst) in adj_init:
        if src == target_type and (dst, src) in adj_init:
            a_pair = jnp.stack([adj_init[(src, dst)], adj_het[(src, dst)]])
            b_pair = jnp.stack([adj_init[(dst, src)], adj_het[(dst, src)]])
            g_pair = normalized_multi_g_batched(a_pair, b_pair)         # grid=(2,)
            g_type = src + dst + src
            multi_g[g_type] = g_pair[0]
            hetero_multi_g[g_type] = g_pair[1]

    result = [multi_g, hetero_multi_g]
    jax.block_until_ready(out)
    jax.block_until_ready(edge_h)
    for d in result:
        for v in d.values():
            jax.block_until_ready(v)
    print("KERNEL_OK")
</pallas_src>

<mosaic_0001>
module attributes {stable_mosaic.version = 11 : i64} {
  func.func @bn_relu_kernel(%arg0: i32, %arg1: memref<2xi32, #tpu.memory_space<smem>>, %arg2: memref<1x8x128xf32, #tpu.memory_space<vmem>>, %arg3: memref<1x1x128xf32, #tpu.memory_space<vmem>>, %arg4: memref<1x1x128xf32, #tpu.memory_space<vmem>>, %arg5: memref<1x8x128xf32, #tpu.memory_space<vmem>>) attributes {dimension_semantics = [#tpu.dimension_semantics<parallel>], iteration_bounds = array<i64: 2>, scalar_prefetch = 1 : i64, scratch_operands = 0 : i64, tpu.core_type = #tpu.core_type<tc>, window_params = [{transform_indices = @transform_0, window_bounds = array<i64: 1, 8, 128>}, {transform_indices = @transform_1, window_bounds = array<i64: 1, 1, 128>}, {transform_indices = @transform_2, window_bounds = array<i64: 1, 1, 128>}, {transform_indices = @transform_3, window_bounds = array<i64: 1, 8, 128>}]} {
    %0 = arith.index_cast %arg0 : i32 to index
    %1 = memref.load %arg1[%0] : memref<2xi32, #tpu.memory_space<smem>>
    %c0 = arith.constant 0 : index
    %c0_0 = arith.constant 0 : index
    %c0_1 = arith.constant 0 : index
    %2 = vector.load %arg2[%c0, %c0_0, %c0_1] : memref<1x8x128xf32, #tpu.memory_space<vmem>>, vector<1x8x128xf32>
    %3 = vector.shape_cast %2 : vector<1x8x128xf32> to vector<8x128xf32>
    %4 = tpu.iota {dimensions = array<i32: 0>} : vector<8x128xi32>
    %5 = vector.broadcast %1 : i32 to vector<8x128xi32>
    %6 = arith.cmpi slt, %4, %5 : vector<8x128xi32>
    %7 = arith.extui %6 : vector<8x128xi1> to vector<8x128xi32>
    %8 = arith.sitofp %7 : vector<8x128xi32> to vector<8x128xf32>
    %9 = arith.sitofp %1 : i32 to f32
    %10 = arith.mulf %3, %8 : vector<8x128xf32>
    %cst = arith.constant dense<0.000000e+00> : vector<128xf32>
    %11 = vector.multi_reduction <add>, %10, %cst [0] : vector<8x128xf32> to vector<128xf32>
    %12 = vector.shape_cast %11 : vector<128xf32> to vector<1x128xf32>
    %13 = vector.broadcast %9 : f32 to vector<1x128xf32>
    %14 = arith.divf %12, %13 : vector<1x128xf32>
    %15 = vector.broadcast %14 : vector<1x128xf32> to vector<8x128xf32>
    %16 = arith.subf %3, %15 : vector<8x128xf32>
    %17 = arith.mulf %16, %8 : vector<8x128xf32>
    %18 = arith.mulf %17, %17 : vector<8x128xf32>
    %cst_2 = arith.constant dense<0.000000e+00> : vector<128xf32>
    %19 = vector.multi_reduction <add>, %18, %cst_2 [0] : vector<8x128xf32> to vector<128xf32>
    %20 = vector.shape_cast %19 : vector<128xf32> to vector<1x128xf32>
    %21 = vector.broadcast %9 : f32 to vector<1x128xf32>
    %22 = arith.divf %20, %21 : vector<1x128xf32>
    %23 = vector.broadcast %14 : vector<1x128xf32> to vector<8x128xf32>
    %24 = arith.subf %3, %23 : vector<8x128xf32>
    %cst_3 = arith.constant 9.99999974E-6 : f32
    %25 = vector.broadcast %cst_3 : f32 to vector<1x128xf32>
    %26 = arith.addf %22, %25 : vector<1x128xf32>
    %27 = math.rsqrt %26 : vector<1x128xf32>
    %28 = vector.broadcast %27 : vector<1x128xf32> to vector<8x128xf32>
    %29 = arith.mulf %24, %28 : vector<8x128xf32>
    %c0_4 = arith.constant 0 : index
    %c0_5 = arith.constant 0 : index
    %c0_6 = arith.constant 0 : index
    %30 = vector.load %arg3[%c0_4, %c0_5, %c0_6] : memref<1x1x128xf32, #tpu.memory_space<vmem>>, vector<1x1x128xf32>
    %31 = vector.shape_cast %30 : vector<1x1x128xf32> to vector<1x128xf32>
    %32 = vector.broadcast %31 : vector<1x128xf32> to vector<8x128xf32>
    %33 = arith.mulf %29, %32 : vector<8x128xf32>
    %c0_7 = arith.constant 0 : index
    %c0_8 = arith.constant 0 : index
    %c0_9 = arith.constant 0 : index
    %34 = vector.load %arg4[%c0_7, %c0_8, %c0_9] : memref<1x1x128xf32, #tpu.memory_space<vmem>>, vector<1x1x128xf32>
    %35 = vector.shape_cast %34 : vector<1x1x128xf32> to vector<1x128xf32>
    %36 = vector.broadcast %35 : vector<1x128xf32> to vector<8x128xf32>
    %37 = arith.addf %33, %36 : vector<8x128xf32>
    %cst_10 = arith.constant 0.000000e+00 : f32
    %38 = vector.broadcast %cst_10 : f32 to vector<8x128xf32>
    %39 = arith.maximumf %37, %38 : vector<8x128xf32>
    %40 = arith.mulf %39, %8 : vector<8x128xf32>
    %c0_11 = arith.constant 0 : index
    %c0_12 = arith.constant 0 : index
    %c0_13 = arith.constant 0 : index
    %41 = vector.load %arg5[%c0_11, %c0_12, %c0_13] : memref<1x8x128xf32, #tpu.memory_space<vmem>>, vector<1x8x128xf32>
    %42 = vector.shape_cast %41 : vector<1x8x128xf32> to vector<8x128xf32>
    %43 = vector.shape_cast %40 : vector<8x128xf32> to vector<1x8x128xf32>
    tpu.vector_store %arg5[%c0_11, %c0_12, %c0_13], %43 {strides = array<i32>} : memref<1x8x128xf32, #tpu.memory_space<vmem>>, vector<1x8x128xf32>,
    return
  }
  func.func @transform_0(%arg0: i32, %arg1: memref<2xi32, #tpu.memory_space<smem>>) -> (i32, i32, i32) {
    %c0_i32 = arith.constant 0 : i32
    %c0_i32_0 = arith.constant 0 : i32
    %c0_i32_1 = arith.constant 0 : i32
    return %arg0, %c0_i32, %c0_i32_0 : i32, i32, i32
  }
  func.func @transform_1(%arg0: i32, %arg1: memref<2xi32, #tpu.memory_space<smem>>) -> (i32, i32, i32) {
    %c0_i32 = arith.constant 0 : i32
    %c0_i32_0 = arith.constant 0 : i32
    %c0_i32_1 = arith.constant 0 : i32
    return %arg0, %c0_i32, %c0_i32_0 : i32, i32, i32
  }
  func.func @transform_2(%arg0: i32, %arg1: memref<2xi32, #tpu.memory_space<smem>>) -> (i32, i32, i32) {
    %c0_i32 = arith.constant 0 : i32
    %c0_i32_0 = arith.constant 0 : i32
    %c0_i32_1 = arith.constant 0 : i32
    return %arg0, %c0_i32, %c0_i32_0 : i32, i32, i32
  }
  func.func @transform_3(%arg0: i32, %arg1: memref<2xi32, #tpu.memory_space<smem>>) -> (i32, i32, i32) {
    %c0_i32 = arith.constant 0 : i32
    %c0_i32_0 = arith.constant 0 : i32
    %c0_i32_1 = arith.constant 0 : i32
    return %arg0, %c0_i32, %c0_i32_0 : i32, i32, i32
  }
}

</mosaic_0001>

<bundles_post_ra>
// kernel: tpu_custom_call.1
= control target key start
LH: loop header
LB: loop body
LE: loop exit
PB: predicated region body
PF: predicated region fallthrough
CT: control target
= control target key end

     0   :  { %s543_s15 = smov [#allocation3]   ;;  %s735_s0 = inlined_call_operand.hbm [shape: s32[2], index: 0, kind: input, shape index: {}]   ;;  %s736_s1 = inlined_call_operand.hbm [shape: f32[2,8,128], index: 1, kind: input, shape index: {}]   ;;  %s737_s2 = inlined_call_operand.vmem [shape: f32[2,1,128], index: 2, kind: input, shape index: {}]   ;;  %s738_s3 = inlined_call_operand.vmem [shape: f32[2,1,128], index: 3, kind: input, shape index: {}]   ;;  %s739_s4 = inlined_call_operand.hbm [shape: f32[2,8,128], index: 4, kind: output, shape index: {}]  }
   0x1   :  { %10 = dma.hbm_to_smem %s735_s0, 16, %s543_s15, [#allocation2] }
   0x2   :  { %517 = dma.done.wait [#allocation2], 16 }
   0x3   :  { %518 = vsyncadd [#allocation2], 4294967280 }
   0x4   :  { %12 = sfence }
   0x5   :  { %13 = vsyncpa [#allocation5], 0 }
   0x6   :  { %15 = vsyncpa [#allocation5 + $0x1], 0 }
   0x7   :  { %16 = vsyncpa [#allocation6], 0 }
   0x8   :  { %18 = vsyncpa [#allocation6 + $0x1], 0  ;;  %s575_s18 = smov 0   ;;  %s577_s19 = smov 0  }
   0x9   :  { %s579_s20 = smov 0   ;;  %s581_s21 = smov 0  }
   0xa LB: > { %s596_s0 = sadd.s32 4294967295, %s541_s21   ;;  %s372_s22 = sadd.s32 4294967294, %s541_s21   ;;  %s541_s21 = sphi %s581_s21, %s756_s21   ;;  %s537_s20 = sphi %s579_s20, %s755_s20   ;;  %s533_s19 = sphi %s577_s19, %s754_s19   ;;  %s529_s18 = sphi %s575_s18, %s753_s18  }
   0xb   : > { %s600_s23 = sadd.s32 1, %s541_s21   ;;  %s31_s24 = sadd.s32 1, %s537_s20 }
   0xc   : > { %s28_s25 = ssub.s32 %s541_s21, %s600_s23  ;;  %p38_p0 = scmp.ne.s32.totalorder %s537_s20, %s533_s19 }
   0xd   : > { %p29_p1 = scmp.eq.s32.totalorder %s28_s25, 0  ;;  %p39_p2 = scmp.eq.s32.totalorder %s541_s21, 0 }
   0xe   : > { %p44_p3 = scmp.ne.s32.totalorder %s533_s19, %s529_s18  ;;  %p45_p4 = scmp.eq.s32.totalorder %s596_s0, 0 }
   0xf   : > { %s612_s26 = scalar_select %p29_p1, %s537_s20, %s31_s24  }
  0x10   : > { %p614_p5 = por %p39_p2, %p38_p0  ;;  %p618_p6 = por %p45_p4, %p44_p3 }
  0x11   : > { %p120_p7 = scmp.eq.s32.totalorder %s596_s0, 1  ;;  %p126_p8 = scmp.eq.s32.totalorder %s372_s22, 1 }
  0x12   : > { %s743_s28 = scalar_select %p618_p6, 1, 0 }
  0x13   : > { %p399_p10 = scmp.lt.s32.totalorder %s541_s21, 2  ;;  %p625_p11 = por %p120_p7, %p38_p0 }
  0x14   : > { %p629_p12 = por %p126_p8, %p44_p3  ;;  %s146_s5 = sand.u32 1, %s537_s20  }
  0x15   : > { %s744_s29 = scalar_select %p625_p11, 1, 0 }
  0x16   : > { %s745_s30 = scalar_select %p629_p12, 1, 0 }
  0x17   : > { %s376_s6 = sshll.u32 %s541_s21, 7  ;;  %s375_s7 = sshll.u32 %s146_s5, 3 }
  0x18   : > { %s638_s10 = scalar_lea.hbm %s736_s1, %s376_s6  ;;  %s150_s11 = scalar_lea.vmem [#allocation4], %s375_s7 }
  0x19   : > { %s157_s12 = sshll.u32 %s150_s11, 4  ;;  %p642_p13 = pnand %p399_p10, %p614_p5  ;;  %s646_s12 = int_to_ptr.vmem [resolvable:$true] %s157_s12 }
  0x1a   : > { %s147_s14 = scalar_lea.sflag [#allocation5], %s146_s5  ;;  %s447_s15 = scalar_lea.hbm %s638_s10, 128 }
  0x1b   : > { %p448_p2 = scmp.ne.s32.totalorder %s638_s10, %s447_s15  ;;  %p449_p3 = pneg %p642_p13 }
  0x1c   : > { %s452_s22 = scalar_lea.hbm %s736_s1, 256  ;;  %p453_p5 = scmp.lt.s32.totalorder %s638_s10, %s736_s1 }
  0x1d   : > { %p450_p4 = pnand %p449_p3, %p448_p2  ;;  %p454_p8 = scmp.lt.s32.totalorder %s452_s22, %s447_s15 }
  0x1f   : > { %p451_p7 = pneg %p450_p4  ;;  %p455_p10 = por %p454_p8, %p453_p5 }
  0x21   : > { %p456_p9 = pnand %p455_p10, %p451_p7 }
  0x23   : > { %459 = shalt.err (!%p456_p9)
}
  0x24   : > { %s460_s27 = scalar_lea.vmem %s646_s12, 128  ;;  %s544_s5 = smov [#allocation4]  }
  0x25   : > { %p461_p0 = scmp.ne.s32.totalorder %s646_s12, %s460_s27  ;;  %s465_s6 = sshll.u32 %s544_s5, 4  ;;  %s466_s6 = int_to_ptr.vmem [resolvable:$false] %s465_s6 }
  0x26   : > { %s467_s7 = scalar_lea.vmem %s466_s6, 256  ;;  %p468_p4 = scmp.lt.s32.totalorder %s646_s12, %s466_s6 }
  0x27   : > { %p463_p1 = pnand %p461_p0, %p449_p3  ;;  %p469_p12 = scmp.lt.s32.totalorder %s467_s7, %s460_s27 }
  0x29   : > { %p464_p2 = pneg %p463_p1  ;;  %p470_p11 = por %p469_p12, %p468_p4 }
  0x2b   : > { %p471_p6 = pnand %p470_p11, %p464_p2 }
  0x2d   : > { %474 = shalt.err (!%p471_p6)
}
  0x2e   : > { %394 = dma.hbm_to_vmem [thread:$0]  (!%p642_p13), %s638_s10, 128, %s646_s12, %s147_s14  }
  0x2f   : > { %p747_p9 = scmp.lt.s32.totalorder %s541_s21, 3  ;;  %p748_p7 = scmp.ge.s32.totalorder %s541_s21, 1 }
  0x31   : > { %p175_p0 = pnand %p748_p7, %p747_p9 }
  0x32   : > { %s673_s8 = sand.u32 (!%p175_p0), 1, %s533_s19   ;;  %p749_p6 = scmp.ne.s32.totalorder (!%p175_p0), %s743_s28, 0 }
  0x33   : > { %178 = sbr.rel (%p175_p0) target bundleno = 141 (0x8d), region = 32  ;;  %s378_s9 = sshll.u32 (!%p175_p0), %s673_s8, 3 }
  0x34   : > { %s181_s11 = scalar_lea.sflag (!%p175_p0), [#allocation5], %s673_s8  ;;  %s184_s13 = scalar_lea.vmem (!%p175_p0), [#allocation4], %s378_s9 }
  0x38   : > { %520 = dma.done.wait (%p749_p6), %s181_s11, 128  }
  0x39   : > { %522 = vsyncadd (%p749_p6), %s181_s11, 4294967168  ;;  %v221_v0 = vlaneseq  ;;  %s219_s10 = sld [smem:[#allocation3 + %s596_s0]]  ;;  %v220_v2 = vld [vmem:[%s184_s13] sm:$0xff]  ;;  %v545_v5 = vmov 0.0   ;;  %p213_p11 = scmp.lt.s32.totalorder %s596_s0, 1 }
  0x3a   : > { %s212_s25 = scalar_lea.vmem [#allocation7], %s378_s9  ;;  %s384_s5 = sshll.u32 %s596_s0, 7 }
  0x3b   : > { %v222_v1 = vshrl.u32 %v221_v0, 7  ;;  %s214_s28 = scalar_select %p213_p11, %s596_s0, 1 }
  0x3c   : > { %s284_s27 = sshll.u32 %s212_s25, 4  ;;  %s282_s11 = scalar_lea.hbm %s739_s4, %s384_s5  ;;  %s695_s27 = int_to_ptr.vmem [resolvable:$true] %s284_s27 }
  0x3d   : > { %s215_s16 = scalar_lea.vmem %s737_s2, %s214_s28  ;;  %s218_s24 = scalar_lea.vmem %s738_s3, %s214_s28 }
  0x3e   : > { %v381_v28 = vld [vmem:[%s215_s16] ss:$0 sm:$0xff]  ;;  %s271_s13 = scalar_lea.sflag [#allocation6], %s673_s8  ;;  %p750_p13 = scmp.ne.s32.totalorder %s744_s29, 0 }
  0x3f   : > { %s227_s12 = scvt.s32.f32 %s219_s10  ;;  %v223_v3 = vstv %s219_s10  ;;  %v382_v30 = vld [vmem:[%s218_s24] ss:$0 sm:$0xff]  ;;  %s475_s10 = scalar_lea.vmem %s695_s27, 128 }
  0x40   : > { %vm224_vm0 = vcmp.lt.s32.totalorder %v222_v1, %v223_v3  ;;  %p476_p12 = scmp.ne.s32.totalorder %s695_s27, %s475_s10  ;;  %s546_s9 = smov [#allocation7]  }
  0x41   : > { %v235_v4 = vstv %s227_s12  ;;  %v380_v6 = vsel %vm224_vm0, 1.0, %v545_v5  ;;  %s479_s0 = sshll.u32 %s546_s9, 4  ;;  %s480_s0 = int_to_ptr.vmem [resolvable:$false] %s479_s0 }
  0x42   : > { %435 = vrcp.f32 %v235_v4  ;;  %v228_v7 = vmul.f32 %v380_v6, %v220_v2  ;;  %p477_p1 = pnand %p476_p12, %p750_p13  ;;  %s481_s12 = scalar_lea.vmem %s480_s0, 256 }
  0x43   : > { %p482_p5 = scmp.lt.s32.totalorder %s695_s27, %s480_s0  ;;  %p483_p8 = scmp.lt.s32.totalorder %s481_s12, %s475_s10 }
  0x44   : > { %v229_v8 = vrot.slane %v228_v7, 4  ;;  %p478_p3 = pneg %p477_p1 }
  0x45   : > { %p484_p10 = por %p483_p8, %p482_p5 }
  0x46   : > { %v230_v9 = vadd.f32 %v229_v8, %v228_v7 }
  0x47   : > { %p485_p2 = pnand %p484_p10, %p478_p3 }
  0x48   : > { %v231_v10 = vrot.slane %v230_v9, 2 }
  0x4a   : > { %v232_v11 = vadd.f32 %v231_v10, %v230_v9 }
  0x4c   : > { %v233_v12 = vrot.slane %v232_v11, 1 }
  0x4e   : > { %v234_v13 = vadd.f32 %v233_v12, %v232_v11 }
  0x4f   : > { %v436_v14 = vpop.eup %435 }
  0x50   : > { %v237_v15 = vmul.f32 %v436_v14, %v234_v13 }
  0x52   : > { %v238_v16 = vsub.f32 %v220_v2, %v237_v15 }
  0x54   : > { %v239_v17 = vmul.f32 %v380_v6, %v238_v16 }
  0x56   : > { %v240_v18 = vmul.f32 %v239_v17, %v239_v17 }
  0x58   : > { %v241_v19 = vrot.slane %v240_v18, 4 }
  0x5a   : > { %v242_v20 = vadd.f32 %v241_v19, %v240_v18 }
  0x5c   : > { %v243_v21 = vrot.slane %v242_v20, 2 }
  0x5e   : > { %v244_v22 = vadd.f32 %v243_v21, %v242_v20 }
  0x60   : > { %v245_v23 = vrot.slane %v244_v22, 1 }
  0x62   : > { %v246_v24 = vadd.f32 %v245_v23, %v244_v22 }
  0x64   : > { %v247_v25 = vmul.f32 %v436_v14, %v246_v24 }
  0x66   : > { %v248_v26 = vadd.f32 1e-05, %v247_v25 }
  0x68   : > { %437 = vrsqrt.f32 %v248_v26 }
  0x75   : > { %v438_v27 = vpop.eup %437 }
  0x76   : > { %v250_v29 = vmul.f32 %v438_v27, %v238_v16 }
  0x78   : > { %v258_v31 = vmul.f32 %v381_v28, %v250_v29 }
  0x7a   : > { %v266_v32 = vadd.f32 %v382_v30, %v258_v31 }
  0x7c   : > { %v267_v33 = vmax.f32 %v266_v32, 0.0 }
  0x7e   : > { %v268_v34 = vmul.f32 %v380_v6, %v267_v33 }
  0x80   : > { %269 = vst [vmem:[%s212_s25] sm:$0xff] %v268_v34 }
  0x81   : > { %488 = shalt.err (!%p485_p2)
}
  0x82   : > { %s489_s28 = scalar_lea.hbm %s282_s11, 128  ;;  %s493_s15 = scalar_lea.hbm %s739_s4, 256 }
  0x83   : > { %p490_p4 = scmp.ne.s32.totalorder %s282_s11, %s489_s28  ;;  %p494_p0 = scmp.lt.s32.totalorder %s282_s11, %s739_s4 }
  0x84   : > { %p495_p6 = scmp.lt.s32.totalorder %s493_s15, %s489_s28 }
  0x85   : > { %p491_p9 = pnand %p490_p4, %p750_p13 }
  0x86   : > { %p496_p11 = por %p495_p6, %p494_p0 }
  0x87   : > { %p492_p7 = pneg %p491_p9 }
  0x89   : > { %p497_p12 = pnand %p496_p11, %p492_p7 }
  0x8b   : > { %500 = shalt.err (!%p497_p12)
}
  0x8c   : > { %389 = dma.vmem_to_hbm [thread:$0]  (%p750_p13), %s695_s27, 128, %s282_s11, %s271_s13  }
  0x8d PF: > { %s296_s22 = sand.u32 1, %s529_s18   ;;  %p751_p1 = scmp.ne.s32.totalorder %s745_s30, 0 }
  0x8e   : > { %p752_p3 = scmp.ge.s32.totalorder %s541_s21, 2  ;;  %s297_s24 = scalar_lea.sflag [#allocation6], %s296_s22 }
  0x90   : > { %p396_p5 = pnand %p752_p3, %p751_p1 }
  0x92   : > { %p397_p8 = pneg %p396_p5 }
  0x94   : > { %524 = dma.done.wait (%p397_p8), %s297_s24, 128  }
  0x95   : > { %526 = vsyncadd (%p397_p8), %s297_s24, 4294967168  ;;  %p21_p10 = scmp.ge.s32.totalorder %s600_s23, 4   ;;  %s753_s18 = smov %s533_s19 }
  0x96   : > { %s754_s19 = smov %s537_s20  ;;  %s755_s20 = smov %s612_s26 }
  0x97   : > { %s756_s21 = smov %s600_s23  ;;  %23 = sbr.rel (!%p21_p10) target bundleno = 10 (0xa), region = 83 }
  0x9c   :  { %302 = vsyncpa [#allocation5], 1 }
  0x9d   :  { %304 = vsyncpa [#allocation5 + $0x1], 1 }
  0x9e   :  { %305 = vsyncpa [#allocation6], 1 }
  0x9f   :  { %307 = vsyncpa [#allocation6 + $0x1], 1 }

</bundles_post_ra>
